<compile_context>
chip_gen: v6e
topology: v6e:2x2x1
jax: 0.10.0
libtpu: 0.0.40
codegen_flags: <defaults>
</compile_context>

<pallas_src>
import jax
import jax.numpy as jnp
from jax.experimental import pallas as pl
from jax.experimental.pallas import tpu as pltpu


def attention_kernel(s_ref, enc_ref, wst_ref, wet_ref, v_ref, out_ref,
                     sproj_ref, logits_ref):
    l = pl.program_id(1)
    nl = pl.num_programs(1)
    block_l, block_b, enc2 = enc_ref.shape
    dec = wst_ref.shape[1]
    src_len = out_ref.shape[0]

    # Decoder-state projection: computed once per batch tile, reused for all
    # src_len tiles.
    @pl.when(l == 0)
    def _():
        sproj_ref[...] = jnp.dot(s_ref[...], wst_ref[...],
                                 preferred_element_type=jnp.float32)

    # enc tile in its original seq-major layout: [block_l, block_b, enc2].
    enc = enc_ref[...]
    e_proj = jnp.dot(enc.reshape(block_l * block_b, enc2), wet_ref[...],
                     preferred_element_type=jnp.float32)
    e_proj = e_proj.reshape(block_l, block_b, dec)
    energy = jnp.tanh(e_proj + sproj_ref[...][None, :, :])       # f32 [TL,TB,DEC]

    # v-projection: VPU multiply + cross-lane reduce (no width-1 MXU matvec).
    v = v_ref[...]                                               # [1, DEC] f32
    tile_logits = jnp.sum(energy * v[None, :, :], axis=-1)       # [TL, TB]

    start = pl.multiple_of(l * block_l, block_l)
    logits_ref[pl.ds(start, block_l), :] = tile_logits

    # Last src_len tile: softmax over the full (padded) logits column.
    @pl.when(l == nl - 1)
    def _():
        logits = logits_ref[...]                                 # [Lp, TB] f32
        l_pad = logits.shape[0]
        if l_pad != src_len:                                     # mask L padding
            pos = jax.lax.broadcasted_iota(jnp.int32, logits.shape, 0)
            logits = jnp.where(pos < src_len, logits, -jnp.inf)
        m = jnp.max(logits, axis=0, keepdims=True)
        p = jnp.exp(logits - m)
        denom = jnp.sum(p, axis=0, keepdims=True)
        attn = p * pl.reciprocal(denom, approx=True)             # EUP divide
        out_ref[...] = attn[:src_len, :].astype(out_ref.dtype)


def attention_forward(s, enc_output, w_attn, w_v, dec_hid_dim, *,
                      block_b=None, block_l=None, compute_dtype=jnp.bfloat16):
    """s: [batch, dec_hid]; enc_output: [src_len, batch, enc_hid*2] (seq-major,
    exactly as the PyTorch module receives it).  Returns [batch, src_len]."""
    src_len, batch, enc2 = enc_output.shape
    dec = dec_hid_dim

    # Tile derivation: batch tile <= 128; src_len tile sized so the
    # double-buffered enc window stays ~8 MiB (safe inside the default scoped
    # VMEM and v7x's 64 MiB physical VMEM).
    itemsize = jnp.dtype(compute_dtype).itemsize
    if block_b is None:
        block_b = batch if batch <= 128 else 128
    if block_l is None:
        rows = (8 * 1024 * 1024) // (2 * block_b * enc2 * itemsize)
        rows = max(8, (rows // 8) * 8)
        block_l = src_len if rows >= src_len else rows
    nb = pl.cdiv(batch, block_b)
    nl = pl.cdiv(src_len, block_l)

    # Split + pre-transpose the attention weight so the kernel never
    # concatenates or transposes:  cat(s, enc) @ W.T == s @ Ws.T + enc @ We.T
    ws_t = jnp.transpose(w_attn[:, :dec]).astype(compute_dtype)   # [DEC,  DEC]
    we_t = jnp.transpose(w_attn[:, dec:]).astype(compute_dtype)   # [ENC2, DEC]
    v = w_v.astype(jnp.float32).reshape(1, dec)                   # [1,   DEC]
    s_c = s.astype(compute_dtype)
    enc_c = enc_output.astype(compute_dtype)                      # keep seq-major

    out_lb = pl.pallas_call(
        attention_kernel,
        out_shape=jax.ShapeDtypeStruct((src_len, batch), jnp.float32),
        grid_spec=pltpu.PrefetchScalarGridSpec(
            num_scalar_prefetch=0,
            grid=(nb, nl),
            in_specs=[
                pl.BlockSpec((block_b, dec), lambda b, l: (b, 0)),              # s
                pl.BlockSpec((block_l, block_b, enc2), lambda b, l: (l, b, 0)),  # enc
                pl.BlockSpec((dec, dec), lambda b, l: (0, 0)),                  # Ws.T
                pl.BlockSpec((enc2, dec), lambda b, l: (0, 0)),                 # We.T
                pl.BlockSpec((1, dec), lambda b, l: (0, 0)),                    # v
            ],
            out_specs=pl.BlockSpec((src_len, block_b), lambda b, l: (0, b)),
            scratch_shapes=[
                pltpu.VMEM((block_b, dec), jnp.float32),            # s @ Ws.T
                pltpu.VMEM((nl * block_l, block_b), jnp.float32),   # logits row
            ]),
        compiler_params=pltpu.CompilerParams(
            dimension_semantics=("parallel", "arbitrary")),
    )(s_c, enc_c, ws_t, we_t, v)

    # Only the tiny [L, B] result is transposed back to [B, L] here.
    return jnp.transpose(out_lb)


def reference_forward(s, enc_output, w_attn, w_v):
    # plain-JAX mirror of the PyTorch module, for a sanity check
    src_len = enc_output.shape[0]
    s_rep = jnp.repeat(s[:, None, :], src_len, axis=1)          # [B, L, DEC]
    enc = jnp.transpose(enc_output, (1, 0, 2))                  # [B, L, ENC2]
    cat = jnp.concatenate([s_rep, enc], axis=2)                 # [B, L, DEC+ENC2]
    energy = jnp.tanh(cat @ w_attn.T)                           # [B, L, DEC]
    attention = (energy @ w_v.T)[..., 0]                        # [B, L]
    return jax.nn.softmax(attention, axis=1)


if __name__ == "__main__":
    # small shapes consistent with the module's forward
    batch = 2
    src_len = 8
    enc_hid_dim = 16
    dec_hid_dim = 32
    enc2 = enc_hid_dim * 2
    in_feat = enc2 + dec_hid_dim

    key = jax.random.PRNGKey(0)
    k1, k2, k3, k4 = jax.random.split(key, 4)

    # deterministic parameter init (PyTorch Linear-style uniform bounds)
    bound_attn = 1.0 / jnp.sqrt(in_feat)
    w_attn = jax.random.uniform(k1, (dec_hid_dim, in_feat), jnp.float32,
                                -bound_attn, bound_attn)
    bound_v = 1.0 / jnp.sqrt(dec_hid_dim)
    w_v = jax.random.uniform(k2, (1, dec_hid_dim), jnp.float32, -bound_v, bound_v)

    # inputs
    s = jax.random.normal(k3, (batch, dec_hid_dim), jnp.float32)
    enc_output = jax.random.normal(k4, (src_len, batch, enc2), jnp.float32)

    out = attention_forward(s, enc_output, w_attn, w_v, dec_hid_dim)
    out = jax.block_until_ready(out)

    ref = reference_forward(s, enc_output, w_attn, w_v)
    assert out.shape == (batch, src_len)
    # bf16 MXU operands + approx reciprocal -> loosened tolerance vs f32 ref
    assert jnp.allclose(out, ref, atol=2e-2, rtol=2e-2), float(jnp.max(jnp.abs(out - ref)))
    assert jnp.allclose(jnp.sum(out, axis=1), 1.0, atol=5e-3)

    print("KERNEL_OK")
</pallas_src>

<mosaic_0001>
module attributes {stable_mosaic.version = 11 : i64} {
  func.func @attention_kernel(%arg0: i32, %arg1: i32, %arg2: memref<2x32xbf16, #tpu.memory_space<vmem>>, %arg3: memref<8x2x32xbf16, #tpu.memory_space<vmem>>, %arg4: memref<32x32xbf16, #tpu.memory_space<vmem>>, %arg5: memref<32x32xbf16, #tpu.memory_space<vmem>>, %arg6: memref<1x32xf32, #tpu.memory_space<vmem>>, %arg7: memref<8x2xf32, #tpu.memory_space<vmem>>, %arg8: memref<2x32xf32, #tpu.memory_space<vmem>>, %arg9: memref<8x2xf32, #tpu.memory_space<vmem>>) attributes {dimension_semantics = [#tpu.dimension_semantics<parallel>, #tpu.dimension_semantics<arbitrary>], iteration_bounds = array<i64: 1, 1>, scalar_prefetch = 0 : i64, scratch_operands = 2 : i64, tpu.core_type = #tpu.core_type<tc>, window_params = [{transform_indices = @transform_0, window_bounds = array<i64: 2, 32>}, {transform_indices = @transform_1, window_bounds = array<i64: 8, 2, 32>}, {pipeline_mode = #tpu.pipeline_mode<synchronous>, transform_indices = @transform_2, window_bounds = array<i64: 32, 32>}, {pipeline_mode = #tpu.pipeline_mode<synchronous>, transform_indices = @transform_3, window_bounds = array<i64: 32, 32>}, {pipeline_mode = #tpu.pipeline_mode<synchronous>, transform_indices = @transform_4, window_bounds = array<i64: 1, 32>}, {transform_indices = @transform_5, window_bounds = array<i64: 8, 2>}]} {
    %c0_i32 = arith.constant 0 : i32
    %0 = arith.cmpi eq, %arg1, %c0_i32 : i32
    %1 = arith.extui %0 : i1 to i32
    %c0_i32_0 = arith.constant 0 : i32
    %2 = arith.cmpi ne, %1, %c0_i32_0 : i32
    scf.if %2 {
      %c0_13 = arith.constant 0 : index
      %c0_14 = arith.constant 0 : index
      %25 = vector.load %arg2[%c0_13, %c0_14] : memref<2x32xbf16, #tpu.memory_space<vmem>>, vector<2x32xbf16>
      %c0_15 = arith.constant 0 : index
      %c0_16 = arith.constant 0 : index
      %26 = vector.load %arg4[%c0_15, %c0_16] : memref<32x32xbf16, #tpu.memory_space<vmem>>, vector<32x32xbf16>
      %cst_17 = arith.constant dense<0.000000e+00> : vector<2x32xf32>
      %27 = tpu.matmul %25, %26, %cst_17 {dimension_numbers = #tpu.dot_dimension_numbers<[1], [0], [0], [1], [0, 0, 1, 1], [], []>} : vector<2x32xbf16>, vector<32x32xbf16>, vector<2x32xf32> -> vector<2x32xf32>
      %c0_18 = arith.constant 0 : index
      %c0_19 = arith.constant 0 : index
      %28 = vector.load %arg8[%c0_18, %c0_19] : memref<2x32xf32, #tpu.memory_space<vmem>>, vector<2x32xf32>
      tpu.vector_store %arg8[%c0_18, %c0_19], %27 {strides = array<i32>} : memref<2x32xf32, #tpu.memory_space<vmem>>, vector<2x32xf32>,
    } else {
    }
    %c0 = arith.constant 0 : index
    %c0_1 = arith.constant 0 : index
    %c0_2 = arith.constant 0 : index
    %3 = vector.load %arg3[%c0, %c0_1, %c0_2] : memref<8x2x32xbf16, #tpu.memory_space<vmem>>, vector<8x2x32xbf16>
    %4 = vector.shape_cast %3 : vector<8x2x32xbf16> to vector<16x32xbf16>
    %c0_3 = arith.constant 0 : index
    %c0_4 = arith.constant 0 : index
    %5 = vector.load %arg5[%c0_3, %c0_4] : memref<32x32xbf16, #tpu.memory_space<vmem>>, vector<32x32xbf16>
    %cst = arith.constant dense<0.000000e+00> : vector<16x32xf32>
    %6 = tpu.matmul %4, %5, %cst {dimension_numbers = #tpu.dot_dimension_numbers<[1], [0], [0], [1], [0, 0, 1, 1], [], []>} : vector<16x32xbf16>, vector<32x32xbf16>, vector<16x32xf32> -> vector<16x32xf32>
    %7 = vector.shape_cast %6 : vector<16x32xf32> to vector<8x2x32xf32>
    %c0_5 = arith.constant 0 : index
    %c0_6 = arith.constant 0 : index
    %8 = vector.load %arg8[%c0_5, %c0_6] : memref<2x32xf32, #tpu.memory_space<vmem>>, vector<2x32xf32>
    %9 = vector.shape_cast %8 : vector<2x32xf32> to vector<1x2x32xf32>
    %10 = vector.broadcast %9 : vector<1x2x32xf32> to vector<8x2x32xf32>
    %11 = arith.addf %7, %10 : vector<8x2x32xf32>
    %12 = math.tanh %11 : vector<8x2x32xf32>
    %c0_7 = arith.constant 0 : index
    %c0_8 = arith.constant 0 : index
    %13 = vector.load %arg6[%c0_7, %c0_8] : memref<1x32xf32, #tpu.memory_space<vmem>>, vector<1x32xf32>
    %14 = vector.shape_cast %13 : vector<1x32xf32> to vector<1x1x32xf32>
    %15 = vector.broadcast %14 : vector<1x1x32xf32> to vector<8x2x32xf32>
    %16 = arith.mulf %12, %15 : vector<8x2x32xf32>
    %cst_9 = arith.constant dense<0.000000e+00> : vector<8x2xf32>
    %17 = vector.multi_reduction <add>, %16, %cst_9 [2] : vector<8x2x32xf32> to vector<8x2xf32>
    %c8_i32 = arith.constant 8 : i32
    %18 = arith.muli %arg1, %c8_i32 : i32
    %19 = tpu.assume_multiple %18, 8 : i32
    %20 = arith.index_cast %19 : i32 to index
    %c0_10 = arith.constant 0 : index
    %21 = vector.load %arg9[%20, %c0_10] : memref<8x2xf32, #tpu.memory_space<vmem>>, vector<8x2xf32>
    tpu.vector_store %arg9[%20, %c0_10], %17 {strides = array<i32>} : memref<8x2xf32, #tpu.memory_space<vmem>>, vector<8x2xf32>,
    %c0_i32_11 = arith.constant 0 : i32
    %22 = arith.cmpi eq, %arg1, %c0_i32_11 : i32
    %23 = arith.extui %22 : i1 to i32
    %c0_i32_12 = arith.constant 0 : i32
    %24 = arith.cmpi ne, %23, %c0_i32_12 : i32
    scf.if %24 {
      %c0_13 = arith.constant 0 : index
      %c0_14 = arith.constant 0 : index
      %25 = vector.load %arg9[%c0_13, %c0_14] : memref<8x2xf32, #tpu.memory_space<vmem>>, vector<8x2xf32>
      %cst_15 = arith.constant dense<0xFF800000> : vector<2xf32>
      %26 = vector.multi_reduction <maximumf>, %25, %cst_15 [0] : vector<8x2xf32> to vector<2xf32>
      %27 = vector.shape_cast %26 : vector<2xf32> to vector<1x2xf32>
      %28 = vector.broadcast %27 : vector<1x2xf32> to vector<8x2xf32>
      %29 = arith.subf %25, %28 : vector<8x2xf32>
      %30 = math.exp %29 : vector<8x2xf32>
      %cst_16 = arith.constant dense<0.000000e+00> : vector<2xf32>
      %31 = vector.multi_reduction <add>, %30, %cst_16 [0] : vector<8x2xf32> to vector<2xf32>
      %32 = vector.shape_cast %31 : vector<2xf32> to vector<1x2xf32>
      %33 = tpu.reciprocal %32 {approx = true} : vector<1x2xf32> -> vector<1x2xf32>
      %34 = vector.broadcast %33 : vector<1x2xf32> to vector<8x2xf32>
      %35 = arith.mulf %30, %34 : vector<8x2xf32>
      %c0_17 = arith.constant 0 : index
      %c0_18 = arith.constant 0 : index
      %36 = vector.load %arg7[%c0_17, %c0_18] : memref<8x2xf32, #tpu.memory_space<vmem>>, vector<8x2xf32>
      tpu.vector_store %arg7[%c0_17, %c0_18], %35 {strides = array<i32>} : memref<8x2xf32, #tpu.memory_space<vmem>>, vector<8x2xf32>,
    } else {
    }
    return
  }
  func.func @transform_0(%arg0: i32, %arg1: i32) -> (i32, i32) {
    %c0_i32 = arith.constant 0 : i32
    %c0_i32_0 = arith.constant 0 : i32
    return %arg0, %c0_i32 : i32, i32
  }
  func.func @transform_1(%arg0: i32, %arg1: i32) -> (i32, i32, i32) {
    %c0_i32 = arith.constant 0 : i32
    %c0_i32_0 = arith.constant 0 : i32
    return %arg1, %arg0, %c0_i32 : i32, i32, i32
  }
  func.func @transform_2(%arg0: i32, %arg1: i32) -> (i32, i32) {
    %c0_i32 = arith.constant 0 : i32
    %c0_i32_0 = arith.constant 0 : i32
    %c0_i32_1 = arith.constant 0 : i32
    return %c0_i32, %c0_i32_0 : i32, i32
  }
  func.func @transform_3(%arg0: i32, %arg1: i32) -> (i32, i32) {
    %c0_i32 = arith.constant 0 : i32
    %c0_i32_0 = arith.constant 0 : i32
    %c0_i32_1 = arith.constant 0 : i32
    return %c0_i32, %c0_i32_0 : i32, i32
  }
  func.func @transform_4(%arg0: i32, %arg1: i32) -> (i32, i32) {
    %c0_i32 = arith.constant 0 : i32
    %c0_i32_0 = arith.constant 0 : i32
    %c0_i32_1 = arith.constant 0 : i32
    return %c0_i32, %c0_i32_0 : i32, i32
  }
  func.func @transform_5(%arg0: i32, %arg1: i32) -> (i32, i32) {
    %c0_i32 = arith.constant 0 : i32
    %c0_i32_0 = arith.constant 0 : i32
    return %c0_i32, %arg0 : i32, i32
  }
}

</mosaic_0001>

<bundles_post_ra>
// kernel: tpu_custom_call.1
= control target key start
LH: loop header
LB: loop body
LE: loop exit
PB: predicated region body
PF: predicated region fallthrough
CT: control target
= control target key end

     0   :  { %10 = vsyncpa [#allocation5], 0  ;;  %s693_s0 = inlined_call_operand.hbm [shape: bf16[2,32], index: 0, kind: input, shape index: {}]   ;;  %s694_s1 = inlined_call_operand.hbm [shape: bf16[8,2,32], index: 1, kind: input, shape index: {}]   ;;  %s695_s2 = inlined_call_operand.hbm [shape: bf16[32,32], index: 2, kind: input, shape index: {}]   ;;  %s696_s3 = inlined_call_operand.hbm [shape: bf16[32,32], index: 3, kind: input, shape index: {}]   ;;  %s697_s4 = inlined_call_operand.vmem [shape: f32[1,32], index: 4, kind: input, shape index: {}]   ;;  %s698_s5 = inlined_call_operand.vmem [shape: f32[8,2], index: 5, kind: output, shape index: {}]  }
   0x1   :  { %11 = vsyncpa [#allocation7], 0 }
   0x2   :  { %12 = vsyncpa [#allocation10], 0  ;;  %s611_s18 = smov [#allocation6]  }
   0x3   :  { %s28_s19 = sshll.u32 %s611_s18, 4  ;;  %s29_s19 = int_to_ptr.vmem [resolvable:$true] %s28_s19 }
   0x4   :  { %s533_s20 = scalar_lea.vmem %s29_s19, 128  ;;  %p538_p1 = scmp.lt.s32.totalorder %s29_s19, %s29_s19 }
   0x5   :  { %p534_p0 = scmp.ne.s32.totalorder %s29_s19, %s533_s20  ;;  %p539_p2 = scmp.lt.s32.totalorder %s533_s20, %s533_s20 }
   0x7   :  { %p540_p3 = por %p539_p2, %p538_p1 }
   0x9   :  { %p541_p4 = pnand %p540_p3, %p534_p0 }
   0xb   :  { %544 = shalt.err (!%p541_p4)
}
   0xc   :  { %s612_s21 = smov 16   ;;  %s613_s22 = smov 1  }
   0xd   :  { %34 = dma.hbm_to_vmem [thread:$0]  %s694_s1, 128, %s29_s19, [#allocation7], %s612_s21, %s612_s21, %s613_s22  }
   0xe   :  { %s614_s25 = smov [#allocation4]   ;;  %s615_s27 = smov [#allocation8]  }
   0xf   :  { %s19_s26 = sshll.u32 %s614_s25, 4  ;;  %s40_s28 = sshll.u32 %s615_s27, 4  ;;  %s20_s26 = int_to_ptr.vmem [resolvable:$true] %s19_s26  ;;  %s41_s28 = int_to_ptr.vmem [resolvable:$true] %s40_s28 }
  0x10   :  { %s553_s29 = scalar_lea.vmem %s20_s26, 16  ;;  %s557_s30 = scalar_lea.vmem %s20_s26, 32 }
  0x11   :  { %p554_p5 = scmp.ne.s32.totalorder %s20_s26, %s553_s29  ;;  %p558_p6 = scmp.lt.s32.totalorder %s20_s26, %s20_s26 }
  0x12   :  { %p559_p7 = scmp.lt.s32.totalorder %s557_s30, %s553_s29 }
  0x14   :  { %p560_p8 = por %p559_p7, %p558_p6 }
  0x16   :  { %p561_p9 = pnand %p560_p8, %p554_p5 }
  0x18   :  { %564 = shalt.err (!%p561_p9)
}
  0x19   :  { %22 = dma.hbm_to_vmem [thread:$0]  %s693_s0, 16, %s20_s26, [#allocation5]  }
  0x1a   :  { %s573_s8 = scalar_lea.vmem %s41_s28, 256  ;;  %p578_p11 = scmp.lt.s32.totalorder %s41_s28, %s41_s28 }
  0x1b   :  { %p574_p10 = scmp.ne.s32.totalorder %s41_s28, %s573_s8  ;;  %p579_p12 = scmp.lt.s32.totalorder %s573_s8, %s573_s8 }
  0x1d   :  { %p580_p13 = por %p579_p12, %p578_p11 }
  0x1f   :  { %p581_p0 = pnand %p580_p13, %p574_p10 }
  0x21   :  { %584 = shalt.err (!%p581_p0)
}
  0x22   :  { %s616_s1 = smov 64   ;;  %s617_s9 = smov 4  }
  0x23   :  { %46 = dma.hbm_to_vmem [thread:$0]  %s695_s2, 256, %s41_s28, [#allocation7], %s616_s1, %s616_s1, %s617_s9  }
  0x24   :  { %s618_s12 = smov [#allocation9]  }
  0x25   :  { %s52_s13 = sshll.u32 %s618_s12, 4  ;;  %s53_s13 = int_to_ptr.vmem [resolvable:$true] %s52_s13 }
  0x26   :  { %s593_s14 = scalar_lea.vmem %s53_s13, 256  ;;  %p598_p2 = scmp.lt.s32.totalorder %s53_s13, %s53_s13 }
  0x27   :  { %p594_p1 = scmp.ne.s32.totalorder %s53_s13, %s593_s14  ;;  %p599_p3 = scmp.lt.s32.totalorder %s593_s14, %s593_s14 }
  0x29   :  { %p600_p4 = por %p599_p3, %p598_p2 }
  0x2b   :  { %p601_p5 = pnand %p600_p4, %p594_p1 }
  0x2d   :  { %604 = shalt.err (!%p601_p5)
}
  0x2e   :  { %58 = dma.hbm_to_vmem [thread:$0]  %s696_s3, 256, %s53_s13, [#allocation10], %s616_s1, %s616_s1, %s617_s9  }
  0x2f   :  { %605 = dma.done.wait [#allocation5], 16  }
  0x30   :  { %606 = vsyncadd [#allocation5], 4294967280 }
  0x31   :  { %607 = dma.done.wait [#allocation7], 384  }
  0x32   :  { %608 = vsyncadd [#allocation7], 4294966912 }
  0x33   :  { %609 = dma.done.wait [#allocation10], 256  }
  0x34   :  { %610 = vsyncadd [#allocation10], 4294967040  ;;  %v619_v0 = vmov 0.0   ;;  %vm620_vm0 = vmmov 0   ;;  %v621_v1 = vmov 1966171168   ;;  %v168_v3 = vlaneseq }
  0x35   :  { %473 = vmatprep.subr.bf16.mxu0 %v619_v0  ;;  %481 = vmatprep.subr.bf16.mxu1 %v619_v0  ;;  %v166_v2 = vunpack.c.l.s4 %v621_v1  ;;  %v501_v6 = vld [vmem:[#allocation8 + $0x8] sm:$0xff]   ;;  %v502_v7 = vld [vmem:[#allocation9 + $0x8] sm:$0xff]   ;;  %v503_v8 = vld [vmem:[#allocation8] sm:$0xff]   ;;  %vm95_vm1 = vcmask 261120   ;;  %v622_v33 = vmov 1983009808  }
  0x36   :  { %477 = vmatprep.mubr.msk.bf16.mxu0 %vm620_vm0, %v619_v0  ;;  %485 = vmatprep.mubr.msk.bf16.mxu1 %vm620_vm0, %v619_v0  ;;  %v666_v5 = vshrl.u32 %v168_v3, 7  ;;  %v504_v9 = vld [vmem:[#allocation9] sm:$0xff]   ;;  %v141_v12 = vld [vmem:[#allocation6] sm:$0x1]  ;;  %v142_v13 = vld [vmem:[#allocation6 + $0x1] sm:$0x1]  ;;  %v271_v34 = vunpack.c.l.s4 %v622_v33 }
  0x37   :  { %v167_v4 = vunpack.c.0.s8 %v166_v2  ;;  %474 = vmatpush3.bf16.msra.mxu0 %v501_v6  ;;  %482 = vmatpush3.bf16.msra.mxu1 %v502_v7  ;;  %v78_v11 = vld [vmem:[#allocation4] sm:$0x1]  ;;  %v143_v14 = vld [vmem:[#allocation6 + $0x2] sm:$0x1]  ;;  %v144_v15 = vld [vmem:[#allocation6 + $0x3] sm:$0x1]  ;;  %v161_v17 = vcombine.low %v141_v12, %v142_v13 }
  0x38   :  { %475 = vmatprep.subr.bf16.mxu0 %v619_v0  ;;  %483 = vmatprep.subr.bf16.mxu1 %v619_v0  ;;  %v145_v16 = vld [vmem:[#allocation6 + $0x4] sm:$0x1]  ;;  %v146_v18 = vld [vmem:[#allocation6 + $0x5] sm:$0x1]  ;;  %v147_v19 = vld [vmem:[#allocation6 + $0x6] sm:$0x1]  ;;  %v162_v21 = vcombine.low %v143_v14, %v144_v15  ;;  %v272_v36 = vunpack.c.0.s8 %v271_v34 }
  0x39   :  { %v170_v10 = vsub.s32 %v167_v4, %v666_v5  ;;  %v148_v20 = vld [vmem:[#allocation6 + $0x7] sm:$0x1]  ;;  %v163_v22 = vcombine.low %v145_v16, %v146_v18  ;;  %vm139_vm2 = vcmask 254976   ;;  %v466_v0 = vld [vmem:[%s697_s4] ss:$0 sm:$0xff]  ;;  %vm411_vm3 = vcmask 1041409  }
  0x3a   :  { %v164_v23 = vcombine.low %v147_v19, %v148_v20  ;;  %v275_v39 = vsub.s32 %v272_v36, %v666_v5  ;;  %vm413_vm4 = vcmask 1042434   ;;  %vm415_vm5 = vcmask 1043459  }
  0x3b   :  { %476 = vmatpush3.bf16.msra.mxu0 %v503_v8  ;;  %484 = vmatpush3.bf16.msra.mxu1 %v504_v9  ;;  %v171_v24 = vrot.slane %v161_v17, %v170_v10  ;;  %v178_v25 = vrot.slane %v162_v21, %v170_v10  ;;  %v185_v26 = vrot.slane %v163_v22, %v170_v10  ;;  %vm417_vm6 = vcmask 1044484  }
  0x3c   :  { %v192_v27 = vrot.slane %v164_v23, %v170_v10  ;;  %vm419_vm7 = vcmask 1045509   ;;  %vm421_vm8 = vcmask 1046534   ;;  %vm423_vm9 = vcmask 1047559  }
  0x3d   :  { %v193_v28 = vcombine.low %v171_v24, %v178_v25  ;;  %vm427_vm10 = vcmask 15360  }
  0x3e   :  { %478 = vmatmul.mubr.msk.bf16.vlgmr.msra.gmra.mxu0 %vm95_vm1, %v78_v11  ;;  %v194_v29 = vcombine.low %v185_v26, %v192_v27  ;;  %v378_v27 = vand.u32 127, %v168_v3 }
  0x3f   :  { %v201_v30 = vrot.slane %v193_v28, %v170_v10 }
  0x40   :  { %v208_v31 = vrot.slane %v194_v29, %v170_v10  ;;  %v381_v29 = vsub.s32 %v378_v27, %v666_v5 }
  0x42   :  { %v209_v32 = vcombine.low %v201_v30, %v208_v31 }
  0x44   :  { %486 = vmatmul.mubr.msk.bf16.vlgmr.msra.gmra.mxu1 %vm95_vm1, %v209_v32 }
  0xfe   :  { %v133_v35 = vpop.f32.mrf.mxu0 }
  0xff   :  { %140 = vst.msk [vmem:[#allocation2] sm:$0x3] %vm139_vm2, %v133_v35 }
 0x100   :  { %v479_v37 = vpop.f32.mrf.mxu0 }
 0x102   :  { %v136_v38 = vpop.f32.mrf.mxu0 }
 0x104   :  { %v480_v40 = vpop.f32.mrf.mxu0  ;;  %v260_v41 = vpop.f32.mrf.mxu1 }
 0x105   :  { %v269_v43 = vcombine.high %v260_v41, %v260_v41  ;;  %v276_v44 = vrot.slane %v260_v41, %v275_v39 }
 0x106   :  { %v311_v42 = vld [vmem:[#allocation2] sm:$0x3]  ;;  %v487_v45 = vpop.f32.mrf.mxu1 }
 0x107   :  { %v283_v46 = vrot.slane %v269_v43, %v275_v39  ;;  %v284_v47 = vcombine.high %v276_v44, %v276_v44  ;;  %v312_v48 = vadd.f32 %v311_v42, %v276_v44 }
 0x108   :  { %v263_v49 = vpop.f32.mrf.mxu1 }
 0x109   :  { %v285_v50 = vcombine.high %v283_v46, %v283_v46  ;;  %v313_v51 = vadd.f32 %v311_v42, %v284_v47  ;;  %v314_v52 = vadd.f32 %v311_v42, %v283_v46  ;;  %505 = vtanh.f32 %v312_v48 }
 0x10a   :  { %v286_v53 = vcombine.high %v263_v49, %v263_v49  ;;  %v293_v54 = vrot.slane %v263_v49, %v275_v39  ;;  %v488_v55 = vpop.f32.mrf.mxu1 }
 0x10b   :  { %v315_v56 = vadd.f32 %v311_v42, %v285_v50  ;;  %507 = vtanh.f32 %v313_v51 }
 0x10c   :  { %509 = vtanh.f32 %v314_v52  ;;  %v300_v57 = vrot.slane %v286_v53, %v275_v39  ;;  %v301_v58 = vcombine.high %v293_v54, %v293_v54  ;;  %v316_v59 = vadd.f32 %v311_v42, %v293_v54 }
 0x10d   :  { %511 = vtanh.f32 %v315_v56 }
 0x10e   :  { %v302_v60 = vcombine.high %v300_v57, %v300_v57  ;;  %v317_v61 = vadd.f32 %v311_v42, %v301_v58  ;;  %v318_v62 = vadd.f32 %v311_v42, %v300_v57  ;;  %513 = vtanh.f32 %v316_v59 }
 0x110   :  { %v319_v63 = vadd.f32 %v311_v42, %v302_v60  ;;  %515 = vtanh.f32 %v317_v61 }
 0x111   :  { %517 = vtanh.f32 %v318_v62 }
 0x112   :  { %519 = vtanh.f32 %v319_v63 }
 0x116   :  { %v506_v1 = vpop.eup %505 }
 0x117   :  { %v335_v2 = vmul.f32 %v506_v1, %v466_v0 }
 0x118   :  { %v508_v4 = vpop.eup %507 }
 0x119   :  { %v510_v6 = vpop.eup %509  ;;  %v344_v7 = vsel %vm139_vm2, %v335_v2, 0.0  ;;  %v336_v8 = vmul.f32 %v508_v4, %v466_v0 }
 0x11a   :  { %v512_v9 = vpop.eup %511  ;;  %v337_v10 = vmul.f32 %v510_v6, %v466_v0  ;;  %345 = vadd.xlane.f32.xlu0 %v344_v7 }
 0x11b   :  { %v514_v11 = vpop.eup %513  ;;  %v338_v13 = vmul.f32 %v512_v9, %v466_v0  ;;  %v347_v15 = vsel %vm139_vm2, %v336_v8, 0.0 }
 0x11c   :  { %v350_v12 = vsel %vm139_vm2, %v337_v10, 0.0  ;;  %v339_v16 = vmul.f32 %v514_v11, %v466_v0 }
 0x11d   :  { %v516_v14 = vpop.eup %515  ;;  %351 = vadd.xlane.f32.xlu1 %v350_v12  ;;  %v353_v18 = vsel %vm139_vm2, %v338_v13, 0.0 }
 0x11e   :  { %v518_v17 = vpop.eup %517  ;;  %348 = vadd.xlane.f32.xlu0 %v347_v15  ;;  %v340_v19 = vmul.f32 %v516_v14, %v466_v0  ;;  %v356_v21 = vsel %vm139_vm2, %v339_v16, 0.0 }
 0x11f   :  { %v520_v20 = vpop.eup %519  ;;  %v341_v22 = vmul.f32 %v518_v17, %v466_v0 }
 0x120   :  { %v359_v23 = vsel %vm139_vm2, %v340_v19, 0.0  ;;  %v342_v24 = vmul.f32 %v520_v20, %v466_v0 }
 0x121   :  { %354 = vadd.xlane.f32.xlu1 %v353_v18  ;;  %v362_v25 = vsel %vm139_vm2, %v341_v22, 0.0 }
 0x122   :  { %357 = vadd.xlane.f32.xlu0 %v356_v21  ;;  %v365_v26 = vsel %vm139_vm2, %v342_v24, 0.0 }
 0x125   :  { %360 = vadd.xlane.f32.xlu1 %v359_v23 }
 0x126   :  { %363 = vadd.xlane.f32.xlu0 %v362_v25 }
 0x129   :  { %366 = vadd.xlane.f32.xlu1 %v365_v26 }
 0x1a3   :  { %v346_v28 = vpop.xlane.xlu0 %345 }
 0x1a4   :  { %v382_v32 = vrot.slane %v346_v28, %v381_v29 }
 0x1a6   :  { %v352_v30 = vpop.xlane.xlu1 %351 }
 0x1a7   :  { %v349_v31 = vpop.xlane.xlu0 %348  ;;  %v390_v34 = vrot.slane %v352_v30, %v381_v29 }
 0x1a8   :  { %v386_v33 = vrot.slane %v349_v31, %v381_v29 }
 0x1aa   :  { %v355_v35 = vpop.xlane.xlu1 %354  ;;  %v412_v36 = vsel %vm411_vm3, %v386_v33, %v382_v32 }
 0x1ab   :  { %v394_v37 = vrot.slane %v355_v35, %v381_v29  ;;  %v414_v38 = vsel %vm413_vm4, %v390_v34, %v412_v36  ;;  %v358_v39 = vpop.xlane.xlu0 %357 }
 0x1ac   :  { %v398_v40 = vrot.slane %v358_v39, %v381_v29 }
 0x1ad   :  { %v416_v41 = vsel %vm415_vm5, %v394_v37, %v414_v38 }
 0x1ae   :  { %v361_v3 = vpop.xlane.xlu1 %360  ;;  %v418_v42 = vsel %vm417_vm6, %v398_v40, %v416_v41 }
 0x1af   :  { %v402_v5 = vrot.slane %v361_v3, %v381_v29  ;;  %v364_v43 = vpop.xlane.xlu0 %363 }
 0x1b0   :  { %v406_v44 = vrot.slane %v364_v43, %v381_v29 }
 0x1b1   :  { %v420_v45 = vsel %vm419_vm7, %v402_v5, %v418_v42 }
 0x1b2   :  { %v367_v46 = vpop.xlane.xlu1 %366  ;;  %v422_v47 = vsel %vm421_vm8, %v406_v44, %v420_v45 }
 0x1b3   :  { %v410_v48 = vrot.slane %v367_v46, %v381_v29 }
 0x1b5   :  { %v424_v49 = vsel %vm423_vm9, %v410_v48, %v422_v47 }
 0x1b6   :  { %428 = vst.msk [vmem:[#allocation3] sm:$0xff] %vm427_vm10, %v424_v49 }
 0x1bd   :  { %v432_v50 = vld [vmem:[#allocation3] sm:$0xff] }
 0x1be   :  { %v433_v51 = vsel %vm427_vm10, %v432_v50, -inf }
 0x1bf   :  { %v434_v52 = vrot.slane %v433_v51, 4 }
 0x1c1   :  { %v435_v53 = vmax.f32 %v433_v51, %v434_v52 }
 0x1c3   :  { %v436_v54 = vrot.slane %v435_v53, 2 }
 0x1c5   :  { %v437_v55 = vmax.f32 %v435_v53, %v436_v54 }
 0x1c7   :  { %v438_v56 = vrot.slane %v437_v55, 1 }
 0x1c9   :  { %v439_v57 = vmax.f32 %v437_v55, %v438_v56 }
 0x1cb   :  { %v440_v58 = vsub.f32 %v432_v50, %v439_v57 }
 0x1cd   :  { %v441_v59 = vmul.f32 1.442695, %v440_v58 }
 0x1cf   :  { %521 = vpow2.f32 %v441_v59 }
 0x1dc   :  { %v522_v60 = vpop.eup %521 }
 0x1dd   :  { %v443_v61 = vsel %vm427_vm10, %v522_v60, 0.0 }
 0x1de   :  { %v444_v62 = vrot.slane %v443_v61, 4 }
 0x1e0   :  { %v445_v63 = vadd.f32 %v444_v62, %v443_v61 }
 0x1e2   :  { %v446_v0 = vrot.slane %v445_v63, 2 }
 0x1e4   :  { %v447_v1 = vadd.f32 %v446_v0, %v445_v63 }
 0x1e6   :  { %v448_v2 = vrot.slane %v447_v1, 1 }
 0x1e8   :  { %v449_v4 = vadd.f32 %v448_v2, %v447_v1 }
 0x1ea   :  { %523 = vrcp.f32 %v449_v4 }
 0x1f7   :  { %v524_v6 = vpop.eup %523 }
 0x1f8   :  { %v451_v7 = vmul.f32 %v524_v6, %v522_v60 }
 0x1fa   :  { %452 = vst.msk [vmem:[%s698_s5] sm:$0xff] %vm427_vm10, %v451_v7 }
 0x1fb   :  { %457 = vsyncpa [#allocation5], 1 }
 0x1fc   :  { %458 = vsyncpa [#allocation7], 1 }
 0x1fd   :  { %459 = vsyncpa [#allocation10], 1 }

</bundles_post_ra>
